<compile_context>
chip_gen: v5e
topology: v5e:2x2
jax: 0.10.0
libtpu: 0.0.40
codegen_flags: <defaults>
</compile_context>

<pallas_src>
import functools

import jax
import jax.numpy as jnp
import numpy as np
from jax.experimental import pallas as pl
from jax.experimental.pallas import tpu as pltpu


def _neg_pearson_kernel(n_time, preds_ref, labels_ref, loss_ref,
                        sx, sy, sxy, sx2, sy2):
    """Grid = (B_tiles, T_tiles); T axis is the reduction axis (last)."""
    k = pl.program_id(1)

    @pl.when(k == 0)
    def _init():
        sx[...] = jnp.zeros_like(sx)
        sy[...] = jnp.zeros_like(sy)
        sxy[...] = jnp.zeros_like(sxy)
        sx2[...] = jnp.zeros_like(sx2)
        sy2[...] = jnp.zeros_like(sy2)

    # Upcast narrow HBM dtypes (bf16/fp16) to f32 for accumulation.
    x = preds_ref[...].astype(jnp.float32)
    y = labels_ref[...].astype(jnp.float32)

    sx[...] += jnp.sum(x, axis=1, keepdims=True)
    sy[...] += jnp.sum(y, axis=1, keepdims=True)
    sxy[...] += jnp.sum(x * y, axis=1, keepdims=True)
    sx2[...] += jnp.sum(x * x, axis=1, keepdims=True)
    sy2[...] += jnp.sum(y * y, axis=1, keepdims=True)

    @pl.when(k == pl.num_programs(1) - 1)
    def _finalize():
        n = jnp.float32(n_time)
        numer = n * sxy[...] - sx[...] * sy[...]
        var_x = n * sx2[...] - sx[...] * sx[...]
        var_y = n * sy2[...] - sy[...] * sy[...]
        # NOTE: like the PyTorch reference, a constant row gives denom == 0 and
        # therefore Inf/NaN; no eps clamp so semantics match exactly.
        pearson = numer * jax.lax.rsqrt(var_x * var_y)  # EUP rsqrt, no divide
        loss_ref[...] = 1.0 - pearson


def _round_up(v, m):
    return (v + m - 1) // m * m


def neg_pearson(preds, labels, *, tb=128, tt=1024, vmem_limit_bytes=None):
    """Pallas Neg_Pearson: returns per-sample (1 - pearson), shape [B], f32."""
    assert preds.shape == labels.shape and preds.ndim == 2
    B, T = preds.shape

    # Aligned tiles: TB multiple of 8 (f32 sublane), TT multiple of 128 (lane),
    # clamped so tiny inputs still work.
    TB = min(tb, _round_up(B, 8))
    TT = min(tt, _round_up(T, 128))
    B_pad = _round_up(B, TB)
    T_pad = _round_up(T, TT)

    # Zero-pad ragged edges (static check -> no-op for aligned shapes).
    # Zeros contribute nothing to the five sums; N below is the true T.
    if (B_pad, T_pad) != (B, T):
        pad = ((0, B_pad - B), (0, T_pad - T))
        preds = jnp.pad(preds, pad)
        labels = jnp.pad(labels, pad)

    grid = (B_pad // TB, T_pad // TT)
    kernel = functools.partial(_neg_pearson_kernel, T)

    cp_kwargs = dict(dimension_semantics=("parallel", "arbitrary"))
    if vmem_limit_bytes is not None:
        cp_kwargs["vmem_limit_bytes"] = vmem_limit_bytes

    out = pl.pallas_call(
        kernel,
        out_shape=jax.ShapeDtypeStruct((B_pad, 1), jnp.float32),
        grid_spec=pltpu.PrefetchScalarGridSpec(
            num_scalar_prefetch=0,
            grid=grid,
            in_specs=[
                pl.BlockSpec((TB, TT), lambda i, k: (i, k)),
                pl.BlockSpec((TB, TT), lambda i, k: (i, k)),
            ],
            out_specs=pl.BlockSpec((TB, 1), lambda i, k: (i, 0)),
            scratch_shapes=[pltpu.VMEM((TB, 1), jnp.float32)] * 5,
        ),
        compiler_params=pltpu.CompilerParams(**cp_kwargs),
    )(preds, labels)
    return out[:B, 0]


def neg_pearson_ref(preds, labels):
    """Pure-JAX reference (mirrors the PyTorch loop, vectorized)."""
    x = preds.astype(jnp.float32)
    y = labels.astype(jnp.float32)
    n = x.shape[1]
    sum_x = jnp.sum(x, axis=1)
    sum_y = jnp.sum(y, axis=1)
    sum_xy = jnp.sum(x * y, axis=1)
    sum_x2 = jnp.sum(x * x, axis=1)
    sum_y2 = jnp.sum(y * y, axis=1)
    pearson = (n * sum_xy - sum_x * sum_y) / jnp.sqrt(
        (n * sum_x2 - sum_x ** 2) * (n * sum_y2 - sum_y ** 2)
    )
    return 1.0 - pearson


if __name__ == "__main__":
    key = jax.random.PRNGKey(0)
    k1, k2, k3, k4 = jax.random.split(key, 4)

    # --- Case 1: f32, ragged shapes, small tiles to exercise the T-reduction
    # grid (init / accumulate / finalize) and the zero-padding path.
    B, T = 2, 300
    preds = jax.random.normal(k1, (B, T), dtype=jnp.float32)
    labels = 0.7 * preds + 0.3 * jax.random.normal(k2, (B, T), dtype=jnp.float32)
    loss = neg_pearson(preds, labels, tt=128)
    jax.block_until_ready(loss)
    ref = neg_pearson_ref(preds, labels)
    np.testing.assert_allclose(np.asarray(loss), np.asarray(ref),
                               rtol=1e-4, atol=1e-5)

    # --- Case 2: bf16 inputs kept narrow in HBM (kernel upcasts internally),
    # aligned shapes, default tiles.
    B2, T2 = 8, 512
    p_bf = jax.random.normal(k3, (B2, T2), dtype=jnp.float32)
    l_bf = 0.5 * p_bf + 0.5 * jax.random.normal(k4, (B2, T2), dtype=jnp.float32)
    p_bf = p_bf.astype(jnp.bfloat16)
    l_bf = l_bf.astype(jnp.bfloat16)
    loss_bf = neg_pearson(p_bf, l_bf)
    jax.block_until_ready(loss_bf)
    ref_bf = neg_pearson_ref(p_bf, l_bf)  # reference also upcasts bf16 -> f32
    np.testing.assert_allclose(np.asarray(loss_bf), np.asarray(ref_bf),
                               rtol=1e-3, atol=1e-4)

    print("KERNEL_OK")
</pallas_src>

<mosaic_0001>
module attributes {stable_mosaic.version = 11 : i64} {
  func.func @_neg_pearson_kernel(%arg0: i32, %arg1: i32, %arg2: memref<8x128xf32, #tpu.memory_space<vmem>>, %arg3: memref<8x128xf32, #tpu.memory_space<vmem>>, %arg4: memref<8x1xf32, #tpu.memory_space<vmem>>, %arg5: memref<8x1xf32, #tpu.memory_space<vmem>>, %arg6: memref<8x1xf32, #tpu.memory_space<vmem>>, %arg7: memref<8x1xf32, #tpu.memory_space<vmem>>, %arg8: memref<8x1xf32, #tpu.memory_space<vmem>>, %arg9: memref<8x1xf32, #tpu.memory_space<vmem>>) attributes {dimension_semantics = [#tpu.dimension_semantics<parallel>, #tpu.dimension_semantics<arbitrary>], iteration_bounds = array<i64: 1, 3>, scalar_prefetch = 0 : i64, scratch_operands = 5 : i64, tpu.core_type = #tpu.core_type<tc>, window_params = [{transform_indices = @transform_0, window_bounds = array<i64: 8, 128>}, {transform_indices = @transform_1, window_bounds = array<i64: 8, 128>}, {transform_indices = @transform_2, window_bounds = array<i64: 8, 1>}]} {
    %c0_i32 = arith.constant 0 : i32
    %0 = arith.cmpi eq, %arg1, %c0_i32 : i32
    %1 = arith.extui %0 : i1 to i32
    %c0_i32_0 = arith.constant 0 : i32
    %2 = arith.cmpi ne, %1, %c0_i32_0 : i32
    scf.if %2 {
      %cst_29 = arith.constant 0.000000e+00 : f32
      %36 = vector.broadcast %cst_29 : f32 to vector<8x1xf32>
      %c0_30 = arith.constant 0 : index
      %c0_31 = arith.constant 0 : index
      %37 = vector.load %arg5[%c0_30, %c0_31] : memref<8x1xf32, #tpu.memory_space<vmem>>, vector<8x1xf32>
      tpu.vector_store %arg5[%c0_30, %c0_31], %36 {strides = array<i32>} : memref<8x1xf32, #tpu.memory_space<vmem>>, vector<8x1xf32>,
      %cst_32 = arith.constant 0.000000e+00 : f32
      %38 = vector.broadcast %cst_32 : f32 to vector<8x1xf32>
      %c0_33 = arith.constant 0 : index
      %c0_34 = arith.constant 0 : index
      %39 = vector.load %arg6[%c0_33, %c0_34] : memref<8x1xf32, #tpu.memory_space<vmem>>, vector<8x1xf32>
      tpu.vector_store %arg6[%c0_33, %c0_34], %38 {strides = array<i32>} : memref<8x1xf32, #tpu.memory_space<vmem>>, vector<8x1xf32>,
      %cst_35 = arith.constant 0.000000e+00 : f32
      %40 = vector.broadcast %cst_35 : f32 to vector<8x1xf32>
      %c0_36 = arith.constant 0 : index
      %c0_37 = arith.constant 0 : index
      %41 = vector.load %arg7[%c0_36, %c0_37] : memref<8x1xf32, #tpu.memory_space<vmem>>, vector<8x1xf32>
      tpu.vector_store %arg7[%c0_36, %c0_37], %40 {strides = array<i32>} : memref<8x1xf32, #tpu.memory_space<vmem>>, vector<8x1xf32>,
      %cst_38 = arith.constant 0.000000e+00 : f32
      %42 = vector.broadcast %cst_38 : f32 to vector<8x1xf32>
      %c0_39 = arith.constant 0 : index
      %c0_40 = arith.constant 0 : index
      %43 = vector.load %arg8[%c0_39, %c0_40] : memref<8x1xf32, #tpu.memory_space<vmem>>, vector<8x1xf32>
      tpu.vector_store %arg8[%c0_39, %c0_40], %42 {strides = array<i32>} : memref<8x1xf32, #tpu.memory_space<vmem>>, vector<8x1xf32>,
      %cst_41 = arith.constant 0.000000e+00 : f32
      %44 = vector.broadcast %cst_41 : f32 to vector<8x1xf32>
      %c0_42 = arith.constant 0 : index
      %c0_43 = arith.constant 0 : index
      %45 = vector.load %arg9[%c0_42, %c0_43] : memref<8x1xf32, #tpu.memory_space<vmem>>, vector<8x1xf32>
      tpu.vector_store %arg9[%c0_42, %c0_43], %44 {strides = array<i32>} : memref<8x1xf32, #tpu.memory_space<vmem>>, vector<8x1xf32>,
    } else {
    }
    %c0 = arith.constant 0 : index
    %c0_1 = arith.constant 0 : index
    %3 = vector.load %arg2[%c0, %c0_1] : memref<8x128xf32, #tpu.memory_space<vmem>>, vector<8x128xf32>
    %c0_2 = arith.constant 0 : index
    %c0_3 = arith.constant 0 : index
    %4 = vector.load %arg3[%c0_2, %c0_3] : memref<8x128xf32, #tpu.memory_space<vmem>>, vector<8x128xf32>
    %c0_4 = arith.constant 0 : index
    %c0_5 = arith.constant 0 : index
    %5 = vector.load %arg5[%c0_4, %c0_5] : memref<8x1xf32, #tpu.memory_space<vmem>>, vector<8x1xf32>
    %cst = arith.constant dense<0.000000e+00> : vector<8xf32>
    %6 = vector.multi_reduction <add>, %3, %cst [1] : vector<8x128xf32> to vector<8xf32>
    %7 = vector.shape_cast %6 : vector<8xf32> to vector<8x1xf32>
    %8 = arith.addf %5, %7 : vector<8x1xf32>
    %c0_6 = arith.constant 0 : index
    %c0_7 = arith.constant 0 : index
    %9 = vector.load %arg5[%c0_6, %c0_7] : memref<8x1xf32, #tpu.memory_space<vmem>>, vector<8x1xf32>
    tpu.vector_store %arg5[%c0_6, %c0_7], %8 {strides = array<i32>} : memref<8x1xf32, #tpu.memory_space<vmem>>, vector<8x1xf32>,
    %c0_8 = arith.constant 0 : index
    %c0_9 = arith.constant 0 : index
    %10 = vector.load %arg6[%c0_8, %c0_9] : memref<8x1xf32, #tpu.memory_space<vmem>>, vector<8x1xf32>
    %cst_10 = arith.constant dense<0.000000e+00> : vector<8xf32>
    %11 = vector.multi_reduction <add>, %4, %cst_10 [1] : vector<8x128xf32> to vector<8xf32>
    %12 = vector.shape_cast %11 : vector<8xf32> to vector<8x1xf32>
    %13 = arith.addf %10, %12 : vector<8x1xf32>
    %c0_11 = arith.constant 0 : index
    %c0_12 = arith.constant 0 : index
    %14 = vector.load %arg6[%c0_11, %c0_12] : memref<8x1xf32, #tpu.memory_space<vmem>>, vector<8x1xf32>
    tpu.vector_store %arg6[%c0_11, %c0_12], %13 {strides = array<i32>} : memref<8x1xf32, #tpu.memory_space<vmem>>, vector<8x1xf32>,
    %c0_13 = arith.constant 0 : index
    %c0_14 = arith.constant 0 : index
    %15 = vector.load %arg7[%c0_13, %c0_14] : memref<8x1xf32, #tpu.memory_space<vmem>>, vector<8x1xf32>
    %16 = arith.mulf %3, %4 : vector<8x128xf32>
    %cst_15 = arith.constant dense<0.000000e+00> : vector<8xf32>
    %17 = vector.multi_reduction <add>, %16, %cst_15 [1] : vector<8x128xf32> to vector<8xf32>
    %18 = vector.shape_cast %17 : vector<8xf32> to vector<8x1xf32>
    %19 = arith.addf %15, %18 : vector<8x1xf32>
    %c0_16 = arith.constant 0 : index
    %c0_17 = arith.constant 0 : index
    %20 = vector.load %arg7[%c0_16, %c0_17] : memref<8x1xf32, #tpu.memory_space<vmem>>, vector<8x1xf32>
    tpu.vector_store %arg7[%c0_16, %c0_17], %19 {strides = array<i32>} : memref<8x1xf32, #tpu.memory_space<vmem>>, vector<8x1xf32>,
    %c0_18 = arith.constant 0 : index
    %c0_19 = arith.constant 0 : index
    %21 = vector.load %arg8[%c0_18, %c0_19] : memref<8x1xf32, #tpu.memory_space<vmem>>, vector<8x1xf32>
    %22 = arith.mulf %3, %3 : vector<8x128xf32>
    %cst_20 = arith.constant dense<0.000000e+00> : vector<8xf32>
    %23 = vector.multi_reduction <add>, %22, %cst_20 [1] : vector<8x128xf32> to vector<8xf32>
    %24 = vector.shape_cast %23 : vector<8xf32> to vector<8x1xf32>
    %25 = arith.addf %21, %24 : vector<8x1xf32>
    %c0_21 = arith.constant 0 : index
    %c0_22 = arith.constant 0 : index
    %26 = vector.load %arg8[%c0_21, %c0_22] : memref<8x1xf32, #tpu.memory_space<vmem>>, vector<8x1xf32>
    tpu.vector_store %arg8[%c0_21, %c0_22], %25 {strides = array<i32>} : memref<8x1xf32, #tpu.memory_space<vmem>>, vector<8x1xf32>,
    %c0_23 = arith.constant 0 : index
    %c0_24 = arith.constant 0 : index
    %27 = vector.load %arg9[%c0_23, %c0_24] : memref<8x1xf32, #tpu.memory_space<vmem>>, vector<8x1xf32>
    %28 = arith.mulf %4, %4 : vector<8x128xf32>
    %cst_25 = arith.constant dense<0.000000e+00> : vector<8xf32>
    %29 = vector.multi_reduction <add>, %28, %cst_25 [1] : vector<8x128xf32> to vector<8xf32>
    %30 = vector.shape_cast %29 : vector<8xf32> to vector<8x1xf32>
    %31 = arith.addf %27, %30 : vector<8x1xf32>
    %c0_26 = arith.constant 0 : index
    %c0_27 = arith.constant 0 : index
    %32 = vector.load %arg9[%c0_26, %c0_27] : memref<8x1xf32, #tpu.memory_space<vmem>>, vector<8x1xf32>
    tpu.vector_store %arg9[%c0_26, %c0_27], %31 {strides = array<i32>} : memref<8x1xf32, #tpu.memory_space<vmem>>, vector<8x1xf32>,
    %c2_i32 = arith.constant 2 : i32
    %33 = arith.cmpi eq, %arg1, %c2_i32 : i32
    %34 = arith.extui %33 : i1 to i32
    %c0_i32_28 = arith.constant 0 : i32
    %35 = arith.cmpi ne, %34, %c0_i32_28 : i32
    scf.if %35 {
      %c0_29 = arith.constant 0 : index
      %c0_30 = arith.constant 0 : index
      %36 = vector.load %arg7[%c0_29, %c0_30] : memref<8x1xf32, #tpu.memory_space<vmem>>, vector<8x1xf32>
      %cst_31 = arith.constant 3.000000e+02 : f32
      %37 = vector.broadcast %cst_31 : f32 to vector<8x1xf32>
      %38 = arith.mulf %37, %36 : vector<8x1xf32>
      %c0_32 = arith.constant 0 : index
      %c0_33 = arith.constant 0 : index
      %39 = vector.load %arg5[%c0_32, %c0_33] : memref<8x1xf32, #tpu.memory_space<vmem>>, vector<8x1xf32>
      %c0_34 = arith.constant 0 : index
      %c0_35 = arith.constant 0 : index
      %40 = vector.load %arg6[%c0_34, %c0_35] : memref<8x1xf32, #tpu.memory_space<vmem>>, vector<8x1xf32>
      %41 = arith.mulf %39, %40 : vector<8x1xf32>
      %42 = arith.subf %38, %41 : vector<8x1xf32>
      %c0_36 = arith.constant 0 : index
      %c0_37 = arith.constant 0 : index
      %43 = vector.load %arg8[%c0_36, %c0_37] : memref<8x1xf32, #tpu.memory_space<vmem>>, vector<8x1xf32>
      %cst_38 = arith.constant 3.000000e+02 : f32
      %44 = vector.broadcast %cst_38 : f32 to vector<8x1xf32>
      %45 = arith.mulf %44, %43 : vector<8x1xf32>
      %c0_39 = arith.constant 0 : index
      %c0_40 = arith.constant 0 : index
      %46 = vector.load %arg5[%c0_39, %c0_40] : memref<8x1xf32, #tpu.memory_space<vmem>>, vector<8x1xf32>
      %c0_41 = arith.constant 0 : index
      %c0_42 = arith.constant 0 : index
      %47 = vector.load %arg5[%c0_41, %c0_42] : memref<8x1xf32, #tpu.memory_space<vmem>>, vector<8x1xf32>
      %48 = arith.mulf %46, %47 : vector<8x1xf32>
      %49 = arith.subf %45, %48 : vector<8x1xf32>
      %c0_43 = arith.constant 0 : index
      %c0_44 = arith.constant 0 : index
      %50 = vector.load %arg9[%c0_43, %c0_44] : memref<8x1xf32, #tpu.memory_space<vmem>>, vector<8x1xf32>
      %cst_45 = arith.constant 3.000000e+02 : f32
      %51 = vector.broadcast %cst_45 : f32 to vector<8x1xf32>
      %52 = arith.mulf %51, %50 : vector<8x1xf32>
      %c0_46 = arith.constant 0 : index
      %c0_47 = arith.constant 0 : index
      %53 = vector.load %arg6[%c0_46, %c0_47] : memref<8x1xf32, #tpu.memory_space<vmem>>, vector<8x1xf32>
      %c0_48 = arith.constant 0 : index
      %c0_49 = arith.constant 0 : index
      %54 = vector.load %arg6[%c0_48, %c0_49] : memref<8x1xf32, #tpu.memory_space<vmem>>, vector<8x1xf32>
      %55 = arith.mulf %53, %54 : vector<8x1xf32>
      %56 = arith.subf %52, %55 : vector<8x1xf32>
      %57 = arith.mulf %49, %56 : vector<8x1xf32>
      %58 = math.rsqrt %57 : vector<8x1xf32>
      %59 = arith.mulf %42, %58 : vector<8x1xf32>
      %cst_50 = arith.constant 1.000000e+00 : f32
      %60 = vector.broadcast %cst_50 : f32 to vector<8x1xf32>
      %61 = arith.subf %60, %59 : vector<8x1xf32>
      %c0_51 = arith.constant 0 : index
      %c0_52 = arith.constant 0 : index
      %62 = vector.load %arg4[%c0_51, %c0_52] : memref<8x1xf32, #tpu.memory_space<vmem>>, vector<8x1xf32>
      tpu.vector_store %arg4[%c0_51, %c0_52], %61 {strides = array<i32>} : memref<8x1xf32, #tpu.memory_space<vmem>>, vector<8x1xf32>,
    } else {
    }
    return
  }
  func.func @transform_0(%arg0: i32, %arg1: i32) -> (i32, i32) {
    %c0_i32 = arith.constant 0 : i32
    return %arg0, %arg1 : i32, i32
  }
  func.func @transform_1(%arg0: i32, %arg1: i32) -> (i32, i32) {
    %c0_i32 = arith.constant 0 : i32
    return %arg0, %arg1 : i32, i32
  }
  func.func @transform_2(%arg0: i32, %arg1: i32) -> (i32, i32) {
    %c0_i32 = arith.constant 0 : i32
    %c0_i32_0 = arith.constant 0 : i32
    return %arg0, %c0_i32 : i32, i32
  }
}

</mosaic_0001>

<bundles_post_ra>
// kernel: tpu_custom_call.1
= control target key start
LH: loop header
LB: loop body
LE: loop exit
PB: predicated region body
PF: predicated region fallthrough
CT: control target
= control target key end

     0   :  { %7 = vsyncpa [#allocation8], 0  ;;  %s701_s0 = inlined_call_operand.hbm [shape: f32[8,384], index: 0, kind: input, shape index: {}]   ;;  %s702_s1 = inlined_call_operand.hbm [shape: f32[8,384], index: 1, kind: input, shape index: {}]   ;;  %s703_s2 = inlined_call_operand.vmem [shape: f32[8,1], index: 2, kind: output, shape index: {}]  }
   0x1   :  { %9 = vsyncpa [#allocation8 + $0x1], 0 }
   0x2   :  { %10 = vsyncpa [#allocation10], 0 }
   0x3   :  { %12 = vsyncpa [#allocation10 + $0x1], 0  ;;  %s600_s9 = smov 0   ;;  %s602_s10 = smov 0  }
   0x4   :  { %s604_s11 = smov 0   ;;  %s606_s12 = smov 0  }
   0x5   :  { %s608_s13 = smov 0   ;;  %s610_s14 = smov 0  }
   0x6 LB: > { %s390_s15 = sadd.s32 4294967295, %s582_s14   ;;  %s27_s16 = sadd.s32 1, %s578_s13  ;;  %s582_s14 = sphi %s610_s14, %s18_s14   ;;  %s578_s13 = sphi %s608_s13, %s710_s13   ;;  %s574_s12 = sphi %s606_s12, %s709_s12   ;;  %s570_s11 = sphi %s604_s11, %s708_s11   ;;  %s566_s10 = sphi %s602_s10, %s707_s10   ;;  %s562_s9 = sphi %s600_s9, %s706_s9  }
   0x7   : > { %p28_p0 = scmp.ge.s32.totalorder %s27_s16, 3  ;;  %s39_s17 = sadd.s32 1, %s570_s11 }
   0x8   : > { %p46_p1 = scmp.ne.s32.totalorder %s570_s11, %s566_s10  ;;  %p47_p2 = scmp.eq.s32.totalorder %s582_s14, 0 }
   0x9   : > { %s712_s16 = smov (%p28_p0, %s27_s16), 0  ;;  %p52_p4 = scmp.ne.s32.totalorder %s566_s10, %s562_s9 }
   0xa   : > { %p636_p3 = por %p47_p2, %p46_p1  ;;  %s35_s19 = ssub.s32 %s578_s13, %s712_s16 }
   0xb   : > { %p53_p5 = scmp.eq.s32.totalorder %s390_s15, 0  ;;  %p37_p6 = scmp.eq.s32.totalorder %s35_s19, 0 }
   0xc   : > { %p416_p8 = scmp.lt.s32.totalorder %s582_s14, 3  ;;  %s130_s22 = sand.u32 1, %s570_s11  }
   0xd   : > { %p643_p7 = por %p53_p5, %p52_p4  ;;  %s394_s23 = sshll.u32 %s578_s13, 3 }
   0xe   : > { %s649_s21 = scalar_select %p37_p6, %s570_s11, %s39_s17  }
   0xf   : > { %s393_s24 = sshll.u32 %s130_s22, 3  ;;  %s140_s27 = scalar_lea.hbm %s701_s0, %s394_s23 }
  0x10   : > { %s142_s28 = sshll.u32 %s140_s27, 4  ;;  %s134_s29 = scalar_lea.vmem [#allocation7], %s393_s24  ;;  %s143_s28 = int_to_ptr.hbm [resolvable:$true] %s142_s28 }
  0x11   : > { %s144_s30 = sshll.u32 %s134_s29, 4  ;;  %p410_p9 = pnand %p416_p8, %p636_p3  ;;  %s145_s30 = int_to_ptr.vmem [resolvable:$true] %s144_s30 }
  0x12   : > { %p397_p10 = scmp.ge.s32.totalorder %s582_s14, 1  ;;  %p170_p11 = scmp.lt.s32.totalorder %s582_s14, 4 }
  0x13   : > { %s131_s3 = scalar_lea.sflag [#allocation8], %s130_s22  ;;  %s161_s6 = scalar_lea.hbm %s702_s1, %s394_s23 }
  0x14   : > { %412 = dma.hbm_to_vmem [thread:$0]  (!%p410_p9), %s143_s28, 128, %s145_s30, %s131_s3  }
  0x15   : > { %p171_p12 = pnand %p397_p10, %p170_p11  ;;  %s163_s7 = sshll.u32 %s161_s6, 4  ;;  %s164_s7 = int_to_ptr.hbm [resolvable:$true] %s163_s7 }
  0x16   : > { %s155_s8 = scalar_lea.vmem [#allocation9], %s393_s24  ;;  %s152_s15 = scalar_lea.sflag [#allocation10], %s130_s22 }
  0x17   : > { %s165_s9 = sshll.u32 %s155_s8, 4  ;;  %174 = sbr.rel (%p171_p12) target bundleno = 210 (0xd2), region = 28  ;;  %s166_s9 = int_to_ptr.vmem [resolvable:$true] %s165_s9 }
  0x18   : > { %415 = dma.hbm_to_vmem [thread:$0]  (!%p410_p9), %s164_s7, 128, %s166_s9, %s152_s15  }
  0x19   : > { %s176_s17 = sand.u32 (!%p171_p12), 1, %s566_s10  }
  0x1a   : > { %s398_s18 = sshll.u32 (!%p171_p12), %s176_s17, 3  ;;  %s177_s19 = scalar_lea.sflag (!%p171_p12), [#allocation8], %s176_s17 }
  0x1b   : > { %s180_s25 = scalar_lea.vmem (!%p171_p12), [#allocation7], %s398_s18 }
  0x1c   : > { %553 = dma.done.wait (%p643_p7), %s177_s19, 128  }
  0x1d   : > { %555 = vsyncadd (%p643_p7), %s177_s19, 4294967168  ;;  %s187_s23 = scalar_lea.sflag [#allocation10], %s176_s17  ;;  %s190_s24 = scalar_lea.vmem [#allocation9], %s398_s18 }
  0x1e   : > { %557 = dma.done.wait (%p643_p7), %s187_s23, 128  }
  0x1f   : > { %559 = vsyncadd (%p643_p7), %s187_s23, 4294967168  ;;  %p400_p13 = scmp.ne.s32.totalorder %s574_s12, 0 }
  0x21   : > { %223 = sbr.rel (%p400_p13) target bundleno = 44 (0x2c), region = 40 }
  0x26   : > { %vm224_vm0 = vcmask 7168   ;;  %v584_v0 = vmov 0.0  }
  0x27   : > { %225 = vst.msk [vmem:[#allocation2] sm:$0xff] %vm224_vm0, %v584_v0 }
  0x28   : > { %226 = vst.msk [vmem:[#allocation3] sm:$0xff] %vm224_vm0, %v584_v0 }
  0x29   : > { %227 = vst.msk [vmem:[#allocation4] sm:$0xff] %vm224_vm0, %v584_v0 }
  0x2a   : > { %228 = vst.msk [vmem:[#allocation5] sm:$0xff] %vm224_vm0, %v584_v0 }
  0x2b   : > { %229 = vst.msk [vmem:[#allocation6] sm:$0xff] %vm224_vm0, %v584_v0 }
  0x2c PF: > { %v230_v1 = vld [vmem:[%s180_s25] sm:$0xff]  ;;  %v231_v2 = vld [vmem:[%s190_s24] sm:$0xff]  ;;  %vm236_vm1 = vcmask 7168   ;;  %p401_p0 = scmp.ne.s32.totalorder %s574_s12, 2 }
  0x2d   : > { %233 = vadd.xlane.f32.xlu0 %v230_v1  ;;  %v244_v3 = vmul.f32 %v231_v2, %v230_v1  ;;  %v256_v4 = vmul.f32 %v231_v2, %v231_v2  ;;  %v250_v5 = vmul.f32 %v230_v1, %v230_v1 }
  0x2e   : > { %v232_v6 = vld [vmem:[#allocation2] sm:$0xff] }
  0x2f   : > { %245 = vadd.xlane.f32.xlu1 %v244_v3  ;;  %257 = vadd.xlane.f32.xlu2 %v256_v4  ;;  %v238_v15 = vld [vmem:[#allocation3] sm:$0xff] }
  0x30   : > { %v243_v8 = vld [vmem:[#allocation4] sm:$0xff] }
  0x31   : > { %v249_v17 = vld [vmem:[#allocation5] sm:$0xff] }
  0x32   : > { %v255_v9 = vld [vmem:[#allocation6] sm:$0xff] }
  0x35   : > { %239 = vadd.xlane.f32.xlu0 %v231_v2 }
  0x37   : > { %251 = vadd.xlane.f32.xlu1 %v250_v5 }
  0xa0   : > { %v234_v7 = vpop.xlane.xlu0 %233 }
  0xa1   : > { %v235_v10 = vadd.f32 %v234_v7, %v232_v6 }
  0xa2   : > { %v246_v11 = vpop.xlane.xlu1 %245  ;;  %v258_v12 = vpop.xlane.xlu2 %257 }
  0xa3   : > { %237 = vst.msk [vmem:[#allocation2] sm:$0xff] %vm236_vm1, %v235_v10  ;;  %v247_v13 = vadd.f32 %v246_v11, %v243_v8  ;;  %v259_v14 = vadd.f32 %v258_v12, %v255_v9 }
  0xa5   : > { %248 = vst.msk [vmem:[#allocation4] sm:$0xff] %vm236_vm1, %v247_v13 }
  0xa6   : > { %260 = vst.msk [vmem:[#allocation6] sm:$0xff] %vm236_vm1, %v259_v14 }
  0xa8   : > { %v240_v16 = vpop.xlane.xlu0 %239 }
  0xa9   : > { %v241_v18 = vadd.f32 %v240_v16, %v238_v15  ;;  %264 = sbr.rel (%p401_p0) target bundleno = 210 (0xd2), region = 44 }
  0xaa   : > { %v252_v19 = vpop.xlane.xlu1 %251 }
  0xab   : > { %242 = vst.msk [vmem:[#allocation3] sm:$0xff] %vm236_vm1, %v241_v18  ;;  %v253_v20 = vadd.f32 %v252_v19, %v249_v17 }
  0xad   : > { %254 = vst.msk [vmem:[#allocation5] sm:$0xff] %vm236_vm1, %v253_v20 }
  0xae   : > { %v267_v21 = vld [vmem:[#allocation2] sm:$0xff]  ;;  %v265_v33 = vld [vmem:[#allocation4] sm:$0xff] }
  0xaf   : > { %v273_v24 = vmul.f32 %v267_v21, %v267_v21  ;;  %v275_v25 = vld [vmem:[#allocation6] sm:$0xff]  ;;  %v266_v36 = vmul.f32 300.0, %v265_v33 }
  0xb0   : > { %v276_v28 = vmul.f32 300.0, %v275_v25 }
  0xb2   : > { %v268_v22 = vld [vmem:[#allocation3] sm:$0xff] }
  0xb3   : > { %v277_v26 = vmul.f32 %v268_v22, %v268_v22  ;;  %v269_v37 = vmul.f32 %v268_v22, %v267_v21 }
  0xb4   : > { %v271_v23 = vld [vmem:[#allocation5] sm:$0xff] }
  0xb5   : > { %v272_v27 = vmul.f32 300.0, %v271_v23  ;;  %v278_v30 = vsub.f32 %v276_v28, %v277_v26  ;;  %v270_v40 = vsub.f32 %v266_v36, %v269_v37 }
  0xb7   : > { %v274_v29 = vsub.f32 %v272_v27, %v273_v24 }
  0xb9   : > { %v279_v31 = vmul.f32 %v278_v30, %v274_v29 }
  0xbb   : > { %466 = vrsqrt.f32 %v279_v31  ;;  %vm286_vm2 = vweird.f32 %v279_v31 }
  0xc1   : > { %v467_v32 = vpop.eup %466 }
  0xc2   : > { %v281_v34 = vmul.f32 %v467_v32, %v279_v31  ;;  %vm287_vm3 = vweird.f32 %v467_v32 }
  0xc3   : > { %vm288_vm4 = vmor %vm286_vm2, %vm287_vm3 }
  0xc4   : > { %v282_v35 = vmul.f32 %v467_v32, %v281_v34 }
  0xc6   : > { %v283_v38 = vmul.f32 0.5, %v282_v35 }
  0xc8   : > { %v284_v39 = vsub.f32 1.5, %v283_v38 }
  0xca   : > { %v285_v41 = vmul.f32 %v467_v32, %v284_v39 }
  0xcc   : > { %v289_v42 = vsel %vm288_vm4, %v467_v32, %v285_v41 }
  0xcd   : > { %v290_v43 = vmul.f32 %v289_v42, %v270_v40 }
  0xcf   : > { %v291_v44 = vsub.f32 1.0, %v290_v43 }
  0xd1   : > { %292 = vst.msk [vmem:[%s703_s2] sm:$0xff] %vm236_vm1, %v291_v44 }
  0xd2 PF: > { %s18_s14 = sadd.s32 1, %s582_s14   ;;  %s706_s9 = smov %s566_s10 }
  0xd3   : > { %p15_p1 = scmp.ge.s32.totalorder %s18_s14, 5   ;;  %s707_s10 = smov %s570_s11 }
  0xd4   : > { %s708_s11 = smov %s649_s21  ;;  %s709_s12 = smov %s578_s13 }
  0xd5   : > { %s710_s13 = smov %s712_s16  ;;  %17 = sbr.rel (!%p15_p1) target bundleno = 6 (0x6), region = 89 }
  0xda   :  { %312 = vsyncpa [#allocation8], 1 }
  0xdb   :  { %314 = vsyncpa [#allocation8 + $0x1], 1 }
  0xdc   :  { %315 = vsyncpa [#allocation10], 1 }
  0xdd   :  { %317 = vsyncpa [#allocation10 + $0x1], 1 }

</bundles_post_ra>
